<compile_context>
chip_gen: v7x
topology: tpu7x:2x2x1
jax: 0.10.0
libtpu: 0.0.40
codegen_flags: <defaults>
</compile_context>

<pallas_src>
import functools

import jax
import jax.numpy as jnp
from jax import lax
from jax.experimental import pallas as pl
from jax.experimental.pallas import tpu as pltpu


def _shortcut_kernel(x_ref, o_ref, *, pad, w_out):
    """x_ref: (BN, C, Hh, 2W)  merged-row view of an NCHW batch chunk
              (merged row r holds original rows 2r | 2r+1 side by side on lanes).
       o_ref: (BN, C_out, Hh*W_out) flattened lane-dense output, C_out = C + 2*pad."""
    BN, C, Hh, W2 = x_ref.shape
    _, C_out, HWo = o_ref.shape
    dt = o_ref.dtype

    xin = x_ref[...]
    # Leading-dim merge only: Hh is a multiple of 8 for every shape this net
    # produces, so the merge is a layout no-op (same class as the previous,
    # proven-good kernel's reshapes).
    lhs = xin.reshape(BN * C * Hh, W2)

    # 0/1 "select even column + place" matrix: output slot r*w_out + j picks
    # input lane 2j (even column of the even row; lanes >= W, i.e. the odd row,
    # are never selected).  Exactly one 1.0 per output column -> the matmul is
    # a bit-exact copy in any dtype, so accumulate in the input dtype.
    k_idx = lax.broadcasted_iota(jnp.int32, (W2, HWo), 0)
    o_idx = lax.broadcasted_iota(jnp.int32, (W2, HWo), 1)
    sel = (k_idx == 2 * (o_idx % w_out)).astype(dt)

    z = jnp.dot(lhs, sel, preferred_element_type=dt)       # (BN*C*Hh, HWo)
    z = z.reshape(BN, C, Hh, HWo)                           # leading split, no-op

    # Merged row r only owns output lanes [r*w_out, (r+1)*w_out); mask the rest
    # and collapse the (sublane) row axis.  Exactly one non-zero term per lane,
    # so the sum is exact.
    r_idx = lax.broadcasted_iota(jnp.int32, (1, 1, Hh, HWo), 2)
    c_idx = lax.broadcasted_iota(jnp.int32, (1, 1, Hh, HWo), 3)
    keep = (c_idx >= r_idx * w_out) & (c_idx < (r_idx + 1) * w_out)
    y = jnp.sum(jnp.where(keep, z, jnp.zeros_like(z)), axis=2)   # (BN, C, HWo)

    # Channel zero-padding: disjoint outer-dim slabs, lane-dense, written once.
    if pad > 0:
        o_ref[:, 0:pad, :] = jnp.zeros((BN, pad, HWo), dt)
    hi = C_out - C - pad
    if hi > 0:
        o_ref[:, pad + C:, :] = jnp.zeros((BN, hi, HWo), dt)
    o_ref[:, pad:pad + C, :] = y


def _cdiv(a, b):
    return -(-a // b)


def _round_up(v, m):
    return _cdiv(v, m) * m


def _multi_tensorcore():
    """True on chips whose TensorCores share one Pallas grid (v7x, v4 megacore)."""
    try:
        kind = jax.devices()[0].device_kind.lower()
    except Exception:
        return False
    return ("v7" in kind) or ("v4" in kind)


def _plan(N, C, Hh, W2, C_out, HWo, itemsize):
    """Pick (images per grid step, grid size, vmem_limit_bytes)."""
    sub = max(8, 32 // itemsize)            # sublane tile: 8 f32 / 16 bf16 / 32 int8
    in_img = C * _round_up(Hh, sub) * _round_up(W2, 128) * itemsize
    out_img = _round_up(C_out, sub) * _round_up(HWo, 128) * itemsize
    # In-kernel temporaries: z and its masked copy dominate (~2x the z slab) + y.
    tmp_img = 2 * C * _round_up(Hh, sub) * _round_up(HWo, 128) * itemsize + out_img
    per_img = 2 * (in_img + out_img) + tmp_img   # x2: Pallas double-buffers in & out
    budget = 10 << 20                            # safe under v5e's 16 MiB scoped default
    bn_cap = max(1, min(N, budget // max(per_img, 1)))

    steps = _cdiv(N, bn_cap)
    if _multi_tensorcore() and N >= 2:
        steps = max(steps, 2)                    # give both TensorCores work
        if steps % 2:
            steps += 1                           # even count -> balanced halves
        steps = min(steps, N)
    bn = _cdiv(N, steps)
    grid = _cdiv(N, bn)                          # ragged last block is allowed

    # Explicit scoped-VMEM limit sized from the footprint (>= v5e's 16 MiB
    # default, never above every generation's physical/scoped capacity).
    vmem_limit = int(min(max(2 * bn * per_img, 32 << 20), 48 << 20))
    return bn, grid, vmem_limit


def lambda_layer_forward(x_nchw, planes):
    """Pallas equivalent of
       LambdaLayer(lambda x: F.pad(x[:, :, ::2, ::2],
                                   (0, 0, 0, 0, planes // 4, planes // 4)))."""
    N, C, H, W = x_nchw.shape
    pad = planes // 4
    if H % 2:
        # TODO(synk): odd H never occurs in this net (32/16/8).  The padded row
        # has an odd index so it is never selected, but this path costs a copy.
        x_nchw = jnp.pad(x_nchw, ((0, 0), (0, 0), (0, 1), (0, 0)))
        H += 1
    Hh = H // 2                      # == H_out == len(range(0, H, 2))
    W_out = (W + 1) // 2
    HWo = Hh * W_out
    C_out = C + 2 * pad

    # Free metadata view: merged row r of the last two dims = original rows 2r|2r+1.
    x_view = x_nchw.reshape(N, C, Hh, 2 * W)

    bn, grid, vmem_limit = _plan(N, C, Hh, 2 * W, C_out, HWo, x_nchw.dtype.itemsize)

    kernel = functools.partial(_shortcut_kernel, pad=pad, w_out=W_out)
    out_flat = pl.pallas_call(
        kernel,
        out_shape=jax.ShapeDtypeStruct((N, C_out, HWo), x_nchw.dtype),
        grid=(grid,),
        in_specs=[pl.BlockSpec((bn, C, Hh, 2 * W), lambda b: (b, 0, 0, 0))],
        out_specs=pl.BlockSpec((bn, C_out, HWo), lambda b: (b, 0, 0)),
        compiler_params=pltpu.CompilerParams(
            dimension_semantics=("parallel",),
            vmem_limit_bytes=vmem_limit),
    )(x_view)

    # Free metadata reshape back to NCHW.
    return out_flat.reshape(N, C_out, Hh, W_out)


if __name__ == "__main__":
    key = jax.random.PRNGKey(0)
    # Small shapes consistent with a CIFAR ResNet stage transition: 4 -> 8 planes.
    x = jax.random.normal(key, (2, 4, 16, 16), dtype=jnp.float32)
    planes = 8  # output planes of the block this shortcut belongs to

    out = jax.block_until_ready(lambda_layer_forward(x, planes))

    # pure-JAX reference of the PyTorch lambda
    pad = planes // 4
    ref = jnp.pad(x[:, :, ::2, ::2], ((0, 0), (pad, pad), (0, 0), (0, 0)))

    assert out.shape == ref.shape, (out.shape, ref.shape)
    assert out.dtype == ref.dtype
    assert jnp.allclose(out, ref), "mismatch vs reference"
    print("KERNEL_OK")
</pallas_src>

<mosaic_0001>
module attributes {stable_mosaic.version = 11 : i64} {
  func.func @_shortcut_kernel(%arg0: i32, %arg1: memref<2x4x8x32xf32, #tpu.memory_space<vmem>>, %arg2: memref<2x8x64xf32, #tpu.memory_space<vmem>>) attributes {dimension_semantics = [#tpu.dimension_semantics<parallel>], iteration_bounds = array<i64: 1>, scalar_prefetch = 0 : i64, scratch_operands = 0 : i64, tpu.core_type = #tpu.core_type<tc>, window_params = [{transform_indices = @transform_0, window_bounds = array<i64: 2, 4, 8, 32>}, {transform_indices = @transform_1, window_bounds = array<i64: 2, 8, 64>}]} {
    %c0 = arith.constant 0 : index
    %c0_0 = arith.constant 0 : index
    %c0_1 = arith.constant 0 : index
    %c0_2 = arith.constant 0 : index
    %0 = vector.load %arg1[%c0, %c0_0, %c0_1, %c0_2] : memref<2x4x8x32xf32, #tpu.memory_space<vmem>>, vector<2x4x8x32xf32>
    %1 = vector.shape_cast %0 : vector<2x4x8x32xf32> to vector<64x32xf32>
    %2 = tpu.iota {dimensions = array<i32: 0>} : vector<32x64xi32>
    %3 = tpu.iota {dimensions = array<i32: 1>} : vector<32x64xi32>
    %c8_i32 = arith.constant 8 : i32
    %c0_i32 = arith.constant 0 : i32
    %4 = arith.cmpi eq, %c8_i32, %c0_i32 : i32
    %c1_i32 = arith.constant 1 : i32
    %5 = arith.select %4, %c1_i32, %c8_i32 : i32
    %6 = vector.broadcast %5 : i32 to vector<32x64xi32>
    %7 = arith.remsi %3, %6 : vector<32x64xi32>
    %c0_i32_3 = arith.constant 0 : i32
    %8 = vector.broadcast %c0_i32_3 : i32 to vector<32x64xi32>
    %9 = arith.cmpi ne, %7, %8 : vector<32x64xi32>
    %c0_i32_4 = arith.constant 0 : i32
    %10 = vector.broadcast %c0_i32_4 : i32 to vector<32x64xi32>
    %11 = arith.cmpi slt, %7, %10 : vector<32x64xi32>
    %c0_i32_5 = arith.constant 0 : i32
    %12 = arith.cmpi slt, %5, %c0_i32_5 : i32
    %13 = vector.broadcast %12 : i1 to vector<32x64xi1>
    %14 = vector.broadcast %13 : vector<32x64xi1> to vector<32x64xi1>
    %15 = arith.xori %11, %14 : vector<32x64xi1>
    %16 = arith.andi %15, %9 : vector<32x64xi1>
    %17 = vector.broadcast %5 : i32 to vector<32x64xi32>
    %18 = arith.addi %7, %17 : vector<32x64xi32>
    %19 = arith.select %16, %18, %7 : vector<32x64xi1>, vector<32x64xi32>
    %c2_i32 = arith.constant 2 : i32
    %20 = vector.broadcast %c2_i32 : i32 to vector<32x64xi32>
    %21 = arith.muli %20, %19 : vector<32x64xi32>
    %22 = arith.cmpi eq, %2, %21 : vector<32x64xi32>
    %23 = arith.extui %22 : vector<32x64xi1> to vector<32x64xi32>
    %24 = arith.sitofp %23 : vector<32x64xi32> to vector<32x64xf32>
    %cst = arith.constant dense<0.000000e+00> : vector<64x64xf32>
    %25 = tpu.matmul %1, %24, %cst {dimension_numbers = #tpu.dot_dimension_numbers<[1], [0], [0], [1], [0, 0, 1, 1], [], []>} : vector<64x32xf32>, vector<32x64xf32>, vector<64x64xf32> -> vector<64x64xf32>
    %26 = vector.shape_cast %25 : vector<64x64xf32> to vector<2x4x8x64xf32>
    %27 = tpu.iota {dimensions = array<i32: 2>} : vector<1x1x8x64xi32>
    %28 = tpu.iota {dimensions = array<i32: 3>} : vector<1x1x8x64xi32>
    %c8_i32_6 = arith.constant 8 : i32
    %29 = vector.broadcast %c8_i32_6 : i32 to vector<1x1x8x64xi32>
    %30 = arith.muli %27, %29 : vector<1x1x8x64xi32>
    %31 = arith.cmpi sge, %28, %30 : vector<1x1x8x64xi32>
    %c1_i32_7 = arith.constant 1 : i32
    %32 = vector.broadcast %c1_i32_7 : i32 to vector<1x1x8x64xi32>
    %33 = arith.addi %27, %32 : vector<1x1x8x64xi32>
    %c8_i32_8 = arith.constant 8 : i32
    %34 = vector.broadcast %c8_i32_8 : i32 to vector<1x1x8x64xi32>
    %35 = arith.muli %33, %34 : vector<1x1x8x64xi32>
    %36 = arith.cmpi slt, %28, %35 : vector<1x1x8x64xi32>
    %37 = arith.andi %31, %36 : vector<1x1x8x64xi1>
    %cst_9 = arith.constant 0.000000e+00 : f32
    %38 = vector.broadcast %cst_9 : f32 to vector<2x4x8x64xf32>
    %39 = vector.shape_cast %37 : vector<1x1x8x64xi1> to vector<1x1x8x64xi1>
    %40 = vector.broadcast %39 : vector<1x1x8x64xi1> to vector<2x4x8x64xi1>
    %41 = arith.select %40, %26, %38 : vector<2x4x8x64xi1>, vector<2x4x8x64xf32>
    %cst_10 = arith.constant dense<0.000000e+00> : vector<2x4x64xf32>
    %42 = vector.multi_reduction <add>, %41, %cst_10 [2] : vector<2x4x8x64xf32> to vector<2x4x64xf32>
    %cst_11 = arith.constant 0.000000e+00 : f32
    %43 = vector.broadcast %cst_11 : f32 to vector<2x2x64xf32>
    %c0_12 = arith.constant 0 : index
    %c0_13 = arith.constant 0 : index
    %c0_14 = arith.constant 0 : index
    %44 = vector.load %arg2[%c0_12, %c0_13, %c0_14] : memref<2x8x64xf32, #tpu.memory_space<vmem>>, vector<2x2x64xf32>
    tpu.vector_store %arg2[%c0_12, %c0_13, %c0_14], %43 {strides = array<i32>} : memref<2x8x64xf32, #tpu.memory_space<vmem>>, vector<2x2x64xf32>,
    %cst_15 = arith.constant 0.000000e+00 : f32
    %45 = vector.broadcast %cst_15 : f32 to vector<2x2x64xf32>
    %c0_16 = arith.constant 0 : index
    %c6 = arith.constant 6 : index
    %c0_17 = arith.constant 0 : index
    %46 = vector.load %arg2[%c0_16, %c6, %c0_17] : memref<2x8x64xf32, #tpu.memory_space<vmem>>, vector<2x2x64xf32>
    tpu.vector_store %arg2[%c0_16, %c6, %c0_17], %45 {strides = array<i32>} : memref<2x8x64xf32, #tpu.memory_space<vmem>>, vector<2x2x64xf32>,
    %c0_18 = arith.constant 0 : index
    %c2 = arith.constant 2 : index
    %c0_19 = arith.constant 0 : index
    %47 = vector.load %arg2[%c0_18, %c2, %c0_19] : memref<2x8x64xf32, #tpu.memory_space<vmem>>, vector<2x4x64xf32>
    tpu.vector_store %arg2[%c0_18, %c2, %c0_19], %42 {strides = array<i32>} : memref<2x8x64xf32, #tpu.memory_space<vmem>>, vector<2x4x64xf32>,
    return
  }
  func.func @transform_0(%arg0: i32) -> (i32, i32, i32, i32) {
    %c0_i32 = arith.constant 0 : i32
    %c0_i32_0 = arith.constant 0 : i32
    %c0_i32_1 = arith.constant 0 : i32
    %c0_i32_2 = arith.constant 0 : i32
    return %arg0, %c0_i32, %c0_i32_0, %c0_i32_1 : i32, i32, i32, i32
  }
  func.func @transform_1(%arg0: i32) -> (i32, i32, i32) {
    %c0_i32 = arith.constant 0 : i32
    %c0_i32_0 = arith.constant 0 : i32
    %c0_i32_1 = arith.constant 0 : i32
    return %arg0, %c0_i32, %c0_i32_0 : i32, i32, i32
  }
}

</mosaic_0001>

<bundles_post_ra>
// kernel: tpu_custom_call.1
= control target key start
LH: loop header
LB: loop body
LE: loop exit
PB: predicated region body
PF: predicated region fallthrough
CT: control target
= control target key end

     0   :  { %6 = vsyncpa [#allocation3], 0  ;;  %s506_s0 = inlined_call_operand.hbm [shape: f32[2,4,8,32], index: 0, kind: input, shape index: {}]   ;;  %s507_s1 = inlined_call_operand.hbm [shape: f32[2,8,64], index: 1, kind: output, shape index: {}]  }
   0x1   :  { %7 = vsyncpa [#allocation4], 0  ;;  %s424_s6 = smov [#allocation2]   ;;  %s376_s10 = scalar_lea.hbm %s506_s0, 1024 }
   0x2   :  { %s13_s7 = sshll.u32 %s424_s6, 4  ;;  %p377_p0 = scmp.ne.s32.totalorder %s506_s0, %s376_s10  ;;  %s14_s7 = int_to_ptr.vmem [resolvable:$true] %s13_s7 }
   0x3   :  { %p380_p1 = scmp.lt.u32.totalorder %s376_s10, %s506_s0 }
   0x5   :  { %p382_p2 = pnand %p380_p1, %p377_p0 }
   0x7   :  { %385 = shalt.err (!%p382_p2)
}
   0x8   :  { %s386_s15 = scalar_lea.vmem %s14_s7, 1024  ;;  %p391_p4 = scmp.lt.s32.totalorder %s14_s7, %s14_s7 }
   0x9   :  { %p387_p3 = scmp.ne.s32.totalorder %s14_s7, %s386_s15  ;;  %p392_p5 = scmp.lt.s32.totalorder %s386_s15, %s386_s15 }
   0xb   :  { %p393_p6 = por %p392_p5, %p391_p4 }
   0xd   :  { %p394_p7 = pnand %p393_p6, %p387_p3 }
   0xf   :  { %397 = shalt.err (!%p394_p7)
}
  0x10   :  { %s425_s16 = smov 128   ;;  %s426_s17 = smov 8  }
  0x11   :  { %19 = dma.hbm_to_vmem [thread:$0]  %s506_s0, 1024, %s14_s7, [#allocation3], %s425_s16, %s425_s16, %s426_s17  }
  0x12   :  { %420 = dma.done.wait [#allocation3], 1024  }
  0x13   :  { %421 = vsyncadd [#allocation3], 4294966272  ;;  %v31_v0 = vlaneseq  ;;  %vm63_vm0 = vcmask 261120   ;;  %v23_v8 = vld [vmem:[#allocation2] sm:$0xff]  ;;  %v427_v10 = vmov 1.0|1.0  }
  0x14   :  { %v27_v9 = vld [vmem:[#allocation2 + $0x20] sm:$0xff]  ;;  %346 = vmatprep.mubr.msk.f32.mxu0 %vm63_vm0, %v23_v8  ;;  %v24_v11 = vld [vmem:[#allocation2 + $0x8] sm:$0xff]  ;;  %v25_v13 = vld [vmem:[#allocation2 + $0x10] sm:$0xff]  ;;  %vm266_vm7 = vcmask 517120   ;;  %v428_v17 = vmov 0.0   ;;  %vm209_vm11 = vcmask 523264  }
  0x15   :  { %v32_v1 = vshrl.u32 %v31_v0, 7  ;;  %v37_v2 = vand.u32 127, %v31_v0  ;;  %352 = vmatprep.mubr.msk.f32.mxu1 %vm63_vm0, %v27_v9  ;;  %v28_v12 = vld [vmem:[#allocation2 + $0x28] sm:$0xff]  ;;  %v29_v14 = vld [vmem:[#allocation2 + $0x30] sm:$0xff]  ;;  %v26_v15 = vld [vmem:[#allocation2 + $0x18] sm:$0xff]  ;;  %vm279_vm12 = vcmask 1041409  }
  0x16   :  { %v30_v16 = vld [vmem:[#allocation2 + $0x38] sm:$0xff]  ;;  %267 = vst.msk [vmem:[#allocation5] sm:$0x3] %vm266_vm7, %v428_v17  ;;  %268 = vst.msk [vmem:[#allocation5 + $0x8] sm:$0x3] %vm266_vm7, %v428_v17  ;;  %vm281_vm13 = vcmask 1042434  }
  0x17   :  { %v33_v3 = vadd.s32 8, %v32_v1  ;;  %v42_v4 = vand.u32 7, %v37_v2  ;;  %v34_v5 = vadd.s32 16, %v32_v1  ;;  %v35_v6 = vadd.s32 24, %v32_v1  ;;  %269 = vst.msk [vmem:[#allocation5 + $0x6] sm:$0x3] %vm266_vm7, %v428_v17 }
  0x18   :  { %270 = vst.msk [vmem:[#allocation5 + $0xe] sm:$0x3] %vm266_vm7, %v428_v17  ;;  %v195_v18 = vadd.s32 1, %v32_v1  ;;  %v193_v19 = vmul.u32 8, %v32_v1  ;;  %s429_s0 = smov [#allocation5]   ;;  %vm283_vm14 = vcmask 1043459  }
  0x19   :  { %v50_v7 = vmul.u32 2, %v42_v4  ;;  %s298_s20 = sshll.u32 %s429_s0, 4  ;;  %vm290_vm15 = vcmask 519168   ;;  %s299_s20 = int_to_ptr.vmem [resolvable:$true] %s298_s20 }
  0x1a   :  { %v196_v20 = vmul.u32 8, %v195_v18  ;;  %vm194_vm8 = vcmp.ge.s32.totalorder %v37_v2, %v193_v19  ;;  %s398_s21 = scalar_lea.vmem %s299_s20, 256  ;;  %p403_p9 = scmp.lt.s32.totalorder %s299_s20, %s299_s20 }
  0x1b   :  { %vm51_vm1 = vcmp.eq.s32.totalorder %v32_v1, %v50_v7  ;;  %vm52_vm2 = vcmp.eq.s32.totalorder %v33_v3, %v50_v7  ;;  %vm53_vm3 = vcmp.eq.s32.totalorder %v34_v5, %v50_v7  ;;  %vm54_vm4 = vcmp.eq.s32.totalorder %v35_v6, %v50_v7  ;;  %p399_p8 = scmp.ne.s32.totalorder %s299_s20, %s398_s21  ;;  %p404_p10 = scmp.lt.s32.totalorder %s398_s21, %s398_s21 }
  0x1c   :  { %vm358_vm5 = vmpackc.low %vm52_vm2, %vm51_vm1  ;;  %vm197_vm9 = vcmp.lt.s32.totalorder %v37_v2, %v196_v20 }
  0x1d   :  { %359 = vmatprep.subr.msk.bf16.mxu0 %vm358_vm5, %v427_v10  ;;  %366 = vmatprep.subr.msk.bf16.mxu1 %vm358_vm5, %v427_v10  ;;  %vm362_vm6 = vmpackc.low %vm54_vm4, %vm53_vm3  ;;  %p405_p11 = por %p404_p10, %p403_p9 }
  0x1e   :  { %361 = vmatpush3.bf16.msk.msra.mxu0 %vm358_vm5, %v427_v10  ;;  %368 = vmatpush3.bf16.msk.msra.mxu1 %vm358_vm5, %v427_v10  ;;  %vm463_vm10 = vmand %vm194_vm8, %vm197_vm9 }
  0x1f   :  { %363 = vmatprep.subr.msk.bf16.mxu0 %vm362_vm6, %v427_v10  ;;  %367 = vmatprep.subr.msk.bf16.mxu1 %vm362_vm6, %v427_v10  ;;  %p406_p12 = pnand %p405_p11, %p399_p8 }
  0x22   :  { %365 = vmatpush3.bf16.msk.msra.mxu0 %vm362_vm6, %v427_v10  ;;  %369 = vmatpush3.bf16.msk.msra.mxu1 %vm362_vm6, %v427_v10 }
  0x25   :  { %347 = vmatmul.mubr.msk.f32.vlgmr.msra.gmra.mrb[0].mxu0 %vm63_vm0, %v24_v11  ;;  %353 = vmatmul.mubr.msk.f32.vlgmr.msra.gmra.mrb[0].mxu1 %vm63_vm0, %v28_v12 }
  0x26   :  { %349 = vmatprep.mubr.msk.f32.mxu0 %vm63_vm0, %v25_v13  ;;  %355 = vmatprep.mubr.msk.f32.mxu1 %vm63_vm0, %v29_v14 }
  0x29   :  { %350 = vmatmul.mubr.msk.f32.gmra.mrb[2].mxu0 %vm63_vm0, %v26_v15  ;;  %356 = vmatmul.mubr.msk.f32.gmra.mrb[2].mxu1 %vm63_vm0, %v30_v16 }
  0xf8   :  { %v348_v22 = vpop.f32.mrb[0].mxu0  ;;  %v354_v23 = vpop.f32.mrb[0].mxu1 }
  0xf9   :  { %v202_v24 = vsel %vm463_vm10, %v348_v22, 0.0  ;;  %v206_v25 = vsel %vm463_vm10, %v354_v23, 0.0  ;;  %v154_v26 = vpop.f32.mrb[1].mxu0  ;;  %v174_v27 = vpop.f32.mrb[1].mxu1 }
  0xfa   :  { %v217_v28 = vsel %vm209_vm11, %v202_v24, 0.0  ;;  %v245_v29 = vsel %vm209_vm11, %v206_v25, 0.0  ;;  %v201_v30 = vsel %vm463_vm10, %v154_v26, 0.0  ;;  %v205_v31 = vsel %vm463_vm10, %v174_v27, 0.0 }
  0xfb   :  { %v218_v32 = vrot.slane %v217_v28, 4  ;;  %v246_v33 = vrot.slane %v245_v29, 4  ;;  %v210_v34 = vsel %vm209_vm11, %v201_v30, 0.0  ;;  %v238_v35 = vsel %vm209_vm11, %v205_v31, 0.0 }
  0xfc   :  { %v211_v36 = vrot.slane %v210_v34, 4  ;;  %v239_v37 = vrot.slane %v238_v35, 4  ;;  %v351_v38 = vpop.f32.mrb[2].mxu0  ;;  %v357_v39 = vpop.f32.mrb[2].mxu1 }
  0xfd   :  { %v219_v40 = vadd.f32 %v218_v32, %v217_v28  ;;  %v247_v41 = vadd.f32 %v246_v33, %v245_v29  ;;  %v204_v42 = vsel %vm463_vm10, %v351_v38, 0.0  ;;  %v208_v43 = vsel %vm463_vm10, %v357_v39, 0.0  ;;  %v164_v44 = vpop.f32.mrb[3].mxu0  ;;  %v184_v45 = vpop.f32.mrb[3].mxu1 }
  0xfe   :  { %v212_v46 = vadd.f32 %v211_v36, %v210_v34  ;;  %v240_v47 = vadd.f32 %v239_v37, %v238_v35  ;;  %v231_v48 = vsel %vm209_vm11, %v204_v42, 0.0  ;;  %v259_v49 = vsel %vm209_vm11, %v208_v43, 0.0 }
  0xff   :  { %v220_v50 = vrot.slane %v219_v40, 2  ;;  %v248_v51 = vrot.slane %v247_v41, 2  ;;  %v232_v52 = vrot.slane %v231_v48, 4  ;;  %v260_v53 = vrot.slane %v259_v49, 4 }
 0x100   :  { %v213_v54 = vrot.slane %v212_v46, 2  ;;  %v241_v55 = vrot.slane %v240_v47, 2  ;;  %v203_v56 = vsel %vm463_vm10, %v164_v44, 0.0  ;;  %v207_v57 = vsel %vm463_vm10, %v184_v45, 0.0 }
 0x101   :  { %v221_v58 = vadd.f32 %v220_v50, %v219_v40  ;;  %v249_v59 = vadd.f32 %v248_v51, %v247_v41  ;;  %v233_v60 = vadd.f32 %v232_v52, %v231_v48  ;;  %v261_v61 = vadd.f32 %v260_v53, %v259_v49 }
 0x102   :  { %v214_v62 = vadd.f32 %v213_v54, %v212_v46  ;;  %v242_v63 = vadd.f32 %v241_v55, %v240_v47  ;;  %v224_v0 = vsel %vm209_vm11, %v203_v56, 0.0  ;;  %v252_v1 = vsel %vm209_vm11, %v207_v57, 0.0 }
 0x103   :  { %v222_v2 = vrot.slane %v221_v58, 1  ;;  %v250_v3 = vrot.slane %v249_v59, 1  ;;  %v234_v4 = vrot.slane %v233_v60, 2  ;;  %v262_v5 = vrot.slane %v261_v61, 2 }
 0x104   :  { %v215_v6 = vrot.slane %v214_v62, 1  ;;  %v243_v7 = vrot.slane %v242_v63, 1  ;;  %v225_v8 = vrot.slane %v224_v0, 4  ;;  %v253_v9 = vrot.slane %v252_v1, 4 }
 0x105   :  { %v223_v10 = vadd.f32 %v222_v2, %v221_v58  ;;  %v251_v11 = vadd.f32 %v250_v3, %v249_v59  ;;  %v235_v16 = vadd.f32 %v234_v4, %v233_v60  ;;  %v263_v17 = vadd.f32 %v262_v5, %v261_v61 }
 0x106   :  { %v216_v12 = vadd.f32 %v215_v6, %v214_v62  ;;  %v244_v13 = vadd.f32 %v243_v7, %v242_v63  ;;  %v226_v14 = vadd.f32 %v225_v8, %v224_v0  ;;  %v254_v15 = vadd.f32 %v253_v9, %v252_v1 }
 0x107   :  { %v236_v24 = vrot.slane %v235_v16, 1  ;;  %v264_v25 = vrot.slane %v263_v17, 1 }
 0x108   :  { %v280_v18 = vsel %vm279_vm12, %v223_v10, %v216_v12  ;;  %v285_v19 = vsel %vm279_vm12, %v251_v11, %v244_v13  ;;  %v227_v20 = vrot.slane %v226_v14, 2  ;;  %v255_v21 = vrot.slane %v254_v15, 2 }
 0x109   :  { %v237_v30 = vadd.f32 %v236_v24, %v235_v16  ;;  %v265_v31 = vadd.f32 %v264_v25, %v263_v17 }
 0x10a   :  { %v228_v22 = vadd.f32 %v227_v20, %v226_v14  ;;  %v256_v23 = vadd.f32 %v255_v21, %v254_v15 }
 0x10c   :  { %v229_v26 = vrot.slane %v228_v22, 1  ;;  %v257_v27 = vrot.slane %v256_v23, 1 }
 0x10e   :  { %v230_v28 = vadd.f32 %v229_v26, %v228_v22  ;;  %v258_v29 = vadd.f32 %v257_v27, %v256_v23 }
 0x110   :  { %v282_v32 = vsel %vm281_vm13, %v230_v28, %v280_v18  ;;  %v286_v33 = vsel %vm281_vm13, %v258_v29, %v285_v19 }
 0x111   :  { %v284_v34 = vsel %vm283_vm14, %v237_v30, %v282_v32  ;;  %v287_v35 = vsel %vm283_vm14, %v265_v31, %v286_v33 }
 0x112   :  { %291 = vst.msk [vmem:[#allocation5 + $0x2] sm:$0xf] %vm290_vm15, %v284_v34  ;;  %292 = vst.msk [vmem:[#allocation5 + $0xa] sm:$0xf] %vm290_vm15, %v287_v35 }
 0x113   :  { %409 = shalt.err (!%p406_p12)
}
 0x114   :  { %s410_s24 = scalar_lea.hbm %s507_s1, 256 }
 0x115   :  { %p411_p13 = scmp.ne.s32.totalorder %s507_s1, %s410_s24  ;;  %p414_p0 = scmp.lt.u32.totalorder %s410_s24, %s507_s1 }
 0x117   :  { %p416_p1 = pnand %p414_p0, %p411_p13 }
 0x119   :  { %419 = shalt.err (!%p416_p1)
}
 0x11a   :  { %304 = dma.vmem_to_hbm [thread:$0]  %s299_s20, 256, %s507_s1, [#allocation4], %s425_s16, %s425_s16, %s426_s17  }
 0x11b   :  { %422 = dma.done.wait [#allocation4], 256  }
 0x11c   :  { %423 = vsyncadd [#allocation4], 4294967040 }
 0x11d   :  { %308 = vsyncpa [#allocation3], 1 }
 0x11e   :  { %309 = vsyncpa [#allocation4], 1 }

</bundles_post_ra>
